<compile_context>
chip_gen: v7x
topology: tpu7x:2x2x1
jax: 0.10.0
libtpu: 0.0.40
codegen_flags: <defaults>
</compile_context>

<pallas_src>
import functools

import jax
import jax.numpy as jnp
from jax.experimental import pallas as pl
from jax.experimental.pallas import tpu as pltpu

# ---- static module hyper-parameters (mirror the PyTorch __init__) -----------
BETA1 = 1.5
BETA2 = 5.0
THR1 = 15.0
THR2 = 10.0
INNER_STEPS = 3  # self.inner_steps


def _net_kernel(x_ref, w1b_ref, w2b_ref, spk2_ref, mem2_ref, *, inner_steps):
    """Whole forward in VMEM: 2 MXU matmuls total + LIF dynamics on the VPU."""
    in_size = w1b_ref.shape[0] - 1          # w1b = [W1 (In,H) ; b1 (1,H)]
    hidden = w1b_ref.shape[1]
    out_size = w2b_ref.shape[1]             # w2b = [W2 (H,O)  ; b2 (1,O)]

    x = x_ref[...]                          # (B, In)
    batch = x.shape[0]

    # Zero-cost static slices of the packed weight refs (no extra operands).
    w1 = w1b_ref[0:in_size, :]              # (In, H)
    b1 = w1b_ref[in_size:in_size + 1, :]    # (1, H)
    w2 = w2b_ref[0:hidden, :]               # (H, O)
    b2 = w2b_ref[hidden:hidden + 1, :]      # (1, O)

    # ---- fc1 is loop-invariant: compute once (hoisted out of the loop). ----
    cur1 = jnp.dot(x, w1, preferred_element_type=jnp.float32) + b1   # (B, H)

    # ---- lif1 recurrence: pure VPU, depends only on the constant cur1. ----
    mem1 = jnp.zeros((batch, hidden), jnp.float32)                   # init_leaky()
    mem1_steps = []
    for _ in range(inner_steps):
        reset1 = jnp.where(mem1 > THR1, THR1, 0.0)
        mem1 = BETA1 * mem1 + cur1 - reset1
        # spk1 = (mem1 > THR1) -- recorded in the PyTorch module but unused.
        mem1_steps.append(mem1)

    # ---- single batched fc2 matmul for ALL inner steps (sublane concat). ---
    mem1_stack = jnp.concatenate(mem1_steps, axis=0)                 # (T*B, H)
    cur2_all = (jnp.dot(mem1_stack, w2, preferred_element_type=jnp.float32)
                + b2)                                                # (T*B, O)

    # ---- lif2 recurrence (elementwise) over per-step slices. ---------------
    mem2 = jnp.zeros((batch, out_size), jnp.float32)                 # init_leaky()
    spk2 = jnp.zeros((batch, out_size), jnp.float32)
    for t in range(inner_steps):
        cur2 = cur2_all[t * batch:(t + 1) * batch, :]                # (B, O)
        reset2 = jnp.where(mem2 > THR2, THR2, 0.0)
        mem2 = BETA2 * mem2 + cur2 - reset2
        spk2 = (mem2 > THR2).astype(jnp.float32)

    # ---- two direct outputs (no in-kernel pack, no wrapper slices). --------
    spk2_ref[...] = spk2
    mem2_ref[...] = mem2


def net_forward(x, w1b, w2b, inner_steps=INNER_STEPS):
    """Single-tile pallas_call; x:(B,In), w1b:(In+1,H), w2b:(H+1,O)."""
    assert inner_steps >= 1, "inner_steps must be >= 1"
    batch, in_size = x.shape
    hidden = w1b.shape[1]
    out_size = w2b.shape[1]

    flops = 2 * batch * in_size * hidden + 2 * inner_steps * batch * hidden * out_size
    bytes_accessed = 4 * (x.size + w1b.size + w2b.size + 2 * batch * out_size)

    vmem_spec = pl.BlockSpec(memory_space=pltpu.MemorySpace.VMEM)
    kernel = functools.partial(_net_kernel, inner_steps=inner_steps)
    spk2, mem2 = pl.pallas_call(
        kernel,
        out_shape=(jax.ShapeDtypeStruct((batch, out_size), jnp.float32),
                   jax.ShapeDtypeStruct((batch, out_size), jnp.float32)),
        in_specs=[vmem_spec] * 3,
        out_specs=(vmem_spec, vmem_spec),
        cost_estimate=pl.CostEstimate(flops=flops, transcendentals=0,
                                      bytes_accessed=bytes_accessed),
    )(x, w1b, w2b)
    return spk2, mem2


def init_params(key, input_size, hidden_size, output_size):
    """nn.Linear-style init U(-1/sqrt(fan_in), 1/sqrt(fan_in)); biases folded
    into the weight buffers ONCE here (not per call)."""
    k1, k2, k3, k4 = jax.random.split(key, 4)
    bound1 = 1.0 / (input_size ** 0.5)
    bound2 = 1.0 / (hidden_size ** 0.5)
    # Stored transposed relative to torch (in, out) so the kernel does x @ W.
    w1 = jax.random.uniform(k1, (input_size, hidden_size), jnp.float32,
                            -bound1, bound1)
    b1 = jax.random.uniform(k2, (1, hidden_size), jnp.float32, -bound1, bound1)
    w2 = jax.random.uniform(k3, (hidden_size, output_size), jnp.float32,
                            -bound2, bound2)
    b2 = jax.random.uniform(k4, (1, output_size), jnp.float32, -bound2, bound2)
    w1b = jnp.concatenate([w1, b1], axis=0)      # (In+1, H)
    w2b = jnp.concatenate([w2, b2], axis=0)      # (H+1, O)
    return w1b, w2b


def _reference_forward(x, w1b, w2b, inner_steps=INNER_STEPS):
    """Pure-JAX reference mirroring the PyTorch module step-for-step."""
    in_size = x.shape[1]
    hidden = w1b.shape[1]
    w1, b1 = w1b[:in_size, :], w1b[in_size:, :]
    w2, b2 = w2b[:hidden, :], w2b[hidden:, :]
    mem1 = jnp.zeros((x.shape[0], w1.shape[1]), jnp.float32)
    mem2 = jnp.zeros((x.shape[0], w2.shape[1]), jnp.float32)
    spk2 = jnp.zeros_like(mem2)
    for _ in range(inner_steps):
        cur1 = x @ w1 + b1
        mem1 = BETA1 * mem1 + cur1 - (mem1 > THR1).astype(jnp.float32) * THR1
        cur2 = mem1 @ w2 + b2
        mem2 = BETA2 * mem2 + cur2 - (mem2 > THR2).astype(jnp.float32) * THR2
        spk2 = (mem2 > THR2).astype(jnp.float32)
    return spk2, mem2


if __name__ == "__main__":
    input_size, hidden_size, output_size = 16, 10, 4
    batch = 8

    key = jax.random.PRNGKey(0)
    kx, kp = jax.random.split(key)
    # Scale inputs up a bit so membrane potentials actually cross thresholds.
    x = 8.0 * jax.random.normal(kx, (batch, input_size), jnp.float32)
    w1b, w2b = init_params(kp, input_size, hidden_size, output_size)

    spk2, mem2 = net_forward(x, w1b, w2b)
    jax.block_until_ready((spk2, mem2))

    ref_spk2, ref_mem2 = _reference_forward(x, w1b, w2b)
    assert spk2.shape == (batch, output_size) and mem2.shape == (batch, output_size)
    assert jnp.allclose(mem2, ref_mem2, atol=1e-4), "mem2 mismatch vs reference"
    # Spikes are a hard threshold; only demand exact equality when no value
    # lands right on the threshold (f32 accumulation-order tolerance).
    near_thr = bool(jnp.any(jnp.abs(ref_mem2 - THR2) < 1e-3))
    assert jnp.array_equal(spk2, ref_spk2) or near_thr, "spk2 mismatch vs reference"

    print("KERNEL_OK")
</pallas_src>

<mosaic_0001>
module attributes {stable_mosaic.version = 11 : i64} {
  func.func @_net_kernel(%arg0: memref<8x16xf32, #tpu.memory_space<vmem>>, %arg1: memref<17x10xf32, #tpu.memory_space<vmem>>, %arg2: memref<11x4xf32, #tpu.memory_space<vmem>>, %arg3: memref<8x4xf32, #tpu.memory_space<vmem>>, %arg4: memref<8x4xf32, #tpu.memory_space<vmem>>) attributes {dimension_semantics = [], scalar_prefetch = 0 : i64, scratch_operands = 0 : i64, tpu.core_type = #tpu.core_type<tc>} {
    %c0 = arith.constant 0 : index
    %c0_0 = arith.constant 0 : index
    %0 = vector.load %arg0[%c0, %c0_0] : memref<8x16xf32, #tpu.memory_space<vmem>>, vector<8x16xf32>
    %c0_1 = arith.constant 0 : index
    %c0_2 = arith.constant 0 : index
    %1 = vector.load %arg1[%c0_1, %c0_2] : memref<17x10xf32, #tpu.memory_space<vmem>>, vector<16x10xf32>
    %c16 = arith.constant 16 : index
    %c0_3 = arith.constant 0 : index
    %2 = vector.load %arg1[%c16, %c0_3] : memref<17x10xf32, #tpu.memory_space<vmem>>, vector<1x10xf32>
    %c0_4 = arith.constant 0 : index
    %c0_5 = arith.constant 0 : index
    %3 = vector.load %arg2[%c0_4, %c0_5] : memref<11x4xf32, #tpu.memory_space<vmem>>, vector<10x4xf32>
    %c10 = arith.constant 10 : index
    %c0_6 = arith.constant 0 : index
    %4 = vector.load %arg2[%c10, %c0_6] : memref<11x4xf32, #tpu.memory_space<vmem>>, vector<1x4xf32>
    %cst = arith.constant dense<0.000000e+00> : vector<8x10xf32>
    %5 = tpu.matmul %0, %1, %cst {dimension_numbers = #tpu.dot_dimension_numbers<[1], [0], [0], [1], [0, 0, 1, 1], [], []>} : vector<8x16xf32>, vector<16x10xf32>, vector<8x10xf32> -> vector<8x10xf32>
    %6 = vector.broadcast %2 : vector<1x10xf32> to vector<8x10xf32>
    %7 = arith.addf %5, %6 : vector<8x10xf32>
    %cst_7 = arith.constant 0.000000e+00 : f32
    %8 = vector.broadcast %cst_7 : f32 to vector<8x10xf32>
    %cst_8 = arith.constant 1.500000e+01 : f32
    %9 = vector.broadcast %cst_8 : f32 to vector<8x10xf32>
    %10 = arith.cmpf ogt, %8, %9 : vector<8x10xf32>
    %cst_9 = arith.constant 1.500000e+01 : f32
    %cst_10 = arith.constant 0.000000e+00 : f32
    %11 = vector.broadcast %cst_9 : f32 to vector<8x10xf32>
    %12 = vector.broadcast %cst_10 : f32 to vector<8x10xf32>
    %13 = arith.select %10, %11, %12 : vector<8x10xi1>, vector<8x10xf32>
    %cst_11 = arith.constant 1.500000e+00 : f32
    %14 = vector.broadcast %cst_11 : f32 to vector<8x10xf32>
    %15 = arith.mulf %14, %8 : vector<8x10xf32>
    %16 = arith.addf %15, %7 : vector<8x10xf32>
    %17 = arith.subf %16, %13 : vector<8x10xf32>
    %cst_12 = arith.constant 1.500000e+01 : f32
    %18 = vector.broadcast %cst_12 : f32 to vector<8x10xf32>
    %19 = arith.cmpf ogt, %17, %18 : vector<8x10xf32>
    %cst_13 = arith.constant 1.500000e+01 : f32
    %cst_14 = arith.constant 0.000000e+00 : f32
    %20 = vector.broadcast %cst_13 : f32 to vector<8x10xf32>
    %21 = vector.broadcast %cst_14 : f32 to vector<8x10xf32>
    %22 = arith.select %19, %20, %21 : vector<8x10xi1>, vector<8x10xf32>
    %cst_15 = arith.constant 1.500000e+00 : f32
    %23 = vector.broadcast %cst_15 : f32 to vector<8x10xf32>
    %24 = arith.mulf %23, %17 : vector<8x10xf32>
    %25 = arith.addf %24, %7 : vector<8x10xf32>
    %26 = arith.subf %25, %22 : vector<8x10xf32>
    %cst_16 = arith.constant 1.500000e+01 : f32
    %27 = vector.broadcast %cst_16 : f32 to vector<8x10xf32>
    %28 = arith.cmpf ogt, %26, %27 : vector<8x10xf32>
    %cst_17 = arith.constant 1.500000e+01 : f32
    %cst_18 = arith.constant 0.000000e+00 : f32
    %29 = vector.broadcast %cst_17 : f32 to vector<8x10xf32>
    %30 = vector.broadcast %cst_18 : f32 to vector<8x10xf32>
    %31 = arith.select %28, %29, %30 : vector<8x10xi1>, vector<8x10xf32>
    %cst_19 = arith.constant 1.500000e+00 : f32
    %32 = vector.broadcast %cst_19 : f32 to vector<8x10xf32>
    %33 = arith.mulf %32, %26 : vector<8x10xf32>
    %34 = arith.addf %33, %7 : vector<8x10xf32>
    %35 = arith.subf %34, %31 : vector<8x10xf32>
    %36 = tpu.concatenate %17, %26, %35 in 0 : vector<8x10xf32>, vector<8x10xf32>, vector<8x10xf32> -> vector<24x10xf32>
    %cst_20 = arith.constant dense<0.000000e+00> : vector<24x4xf32>
    %37 = tpu.matmul %36, %3, %cst_20 {dimension_numbers = #tpu.dot_dimension_numbers<[1], [0], [0], [1], [0, 0, 1, 1], [], []>} : vector<24x10xf32>, vector<10x4xf32>, vector<24x4xf32> -> vector<24x4xf32>
    %38 = vector.broadcast %4 : vector<1x4xf32> to vector<24x4xf32>
    %39 = arith.addf %37, %38 : vector<24x4xf32>
    %cst_21 = arith.constant 0.000000e+00 : f32
    %40 = vector.broadcast %cst_21 : f32 to vector<8x4xf32>
    %41 = vector.extract_strided_slice %39 {offsets = [0, 0], sizes = [8, 4], strides = [1, 1]} : vector<24x4xf32> to vector<8x4xf32>
    %cst_22 = arith.constant 1.000000e+01 : f32
    %42 = vector.broadcast %cst_22 : f32 to vector<8x4xf32>
    %43 = arith.cmpf ogt, %40, %42 : vector<8x4xf32>
    %cst_23 = arith.constant 1.000000e+01 : f32
    %cst_24 = arith.constant 0.000000e+00 : f32
    %44 = vector.broadcast %cst_23 : f32 to vector<8x4xf32>
    %45 = vector.broadcast %cst_24 : f32 to vector<8x4xf32>
    %46 = arith.select %43, %44, %45 : vector<8x4xi1>, vector<8x4xf32>
    %cst_25 = arith.constant 5.000000e+00 : f32
    %47 = vector.broadcast %cst_25 : f32 to vector<8x4xf32>
    %48 = arith.mulf %47, %40 : vector<8x4xf32>
    %49 = arith.addf %48, %41 : vector<8x4xf32>
    %50 = arith.subf %49, %46 : vector<8x4xf32>
    %51 = vector.extract_strided_slice %39 {offsets = [8, 0], sizes = [8, 4], strides = [1, 1]} : vector<24x4xf32> to vector<8x4xf32>
    %cst_26 = arith.constant 1.000000e+01 : f32
    %52 = vector.broadcast %cst_26 : f32 to vector<8x4xf32>
    %53 = arith.cmpf ogt, %50, %52 : vector<8x4xf32>
    %cst_27 = arith.constant 1.000000e+01 : f32
    %cst_28 = arith.constant 0.000000e+00 : f32
    %54 = vector.broadcast %cst_27 : f32 to vector<8x4xf32>
    %55 = vector.broadcast %cst_28 : f32 to vector<8x4xf32>
    %56 = arith.select %53, %54, %55 : vector<8x4xi1>, vector<8x4xf32>
    %cst_29 = arith.constant 5.000000e+00 : f32
    %57 = vector.broadcast %cst_29 : f32 to vector<8x4xf32>
    %58 = arith.mulf %57, %50 : vector<8x4xf32>
    %59 = arith.addf %58, %51 : vector<8x4xf32>
    %60 = arith.subf %59, %56 : vector<8x4xf32>
    %61 = vector.extract_strided_slice %39 {offsets = [16, 0], sizes = [8, 4], strides = [1, 1]} : vector<24x4xf32> to vector<8x4xf32>
    %cst_30 = arith.constant 1.000000e+01 : f32
    %62 = vector.broadcast %cst_30 : f32 to vector<8x4xf32>
    %63 = arith.cmpf ogt, %60, %62 : vector<8x4xf32>
    %cst_31 = arith.constant 1.000000e+01 : f32
    %cst_32 = arith.constant 0.000000e+00 : f32
    %64 = vector.broadcast %cst_31 : f32 to vector<8x4xf32>
    %65 = vector.broadcast %cst_32 : f32 to vector<8x4xf32>
    %66 = arith.select %63, %64, %65 : vector<8x4xi1>, vector<8x4xf32>
    %cst_33 = arith.constant 5.000000e+00 : f32
    %67 = vector.broadcast %cst_33 : f32 to vector<8x4xf32>
    %68 = arith.mulf %67, %60 : vector<8x4xf32>
    %69 = arith.addf %68, %61 : vector<8x4xf32>
    %70 = arith.subf %69, %66 : vector<8x4xf32>
    %cst_34 = arith.constant 1.000000e+01 : f32
    %71 = vector.broadcast %cst_34 : f32 to vector<8x4xf32>
    %72 = arith.cmpf ogt, %70, %71 : vector<8x4xf32>
    %73 = arith.extui %72 : vector<8x4xi1> to vector<8x4xi32>
    %74 = arith.sitofp %73 : vector<8x4xi32> to vector<8x4xf32>
    %c0_35 = arith.constant 0 : index
    %c0_36 = arith.constant 0 : index
    %75 = vector.load %arg3[%c0_35, %c0_36] : memref<8x4xf32, #tpu.memory_space<vmem>>, vector<8x4xf32>
    tpu.vector_store %arg3[%c0_35, %c0_36], %74 {strides = array<i32>} : memref<8x4xf32, #tpu.memory_space<vmem>>, vector<8x4xf32>,
    %c0_37 = arith.constant 0 : index
    %c0_38 = arith.constant 0 : index
    %76 = vector.load %arg4[%c0_37, %c0_38] : memref<8x4xf32, #tpu.memory_space<vmem>>, vector<8x4xf32>
    tpu.vector_store %arg4[%c0_37, %c0_38], %70 {strides = array<i32>} : memref<8x4xf32, #tpu.memory_space<vmem>>, vector<8x4xf32>,
    return
  }
}

</mosaic_0001>

<bundles_post_ra>
// kernel: tpu_custom_call.1
= control target key start
LH: loop header
LB: loop body
LE: loop exit
PB: predicated region body
PF: predicated region fallthrough
CT: control target
= control target key end

     0   :  { %v290_v0 = vmov 0.0|0.0   ;;  %vm291_vm0 = vmmov 0   ;;  %v292_v3 = vmov 0.0   ;;  %vm27_vm1 = vcmask 130048   ;;  %s362_s1 = inlined_call_operand.vmem [shape: f32[17,10], index: 1, kind: input, shape index: {}]   ;;  %s363_s0 = inlined_call_operand.vmem [shape: f32[8,16], index: 0, kind: input, shape index: {}]   ;;  %s364_s2 = inlined_call_operand.vmem [shape: f32[11,4], index: 2, kind: input, shape index: {}]   ;;  %s365_s4 = inlined_call_operand.vmem [shape: f32[8,4], index: 4, kind: output, shape index: {1}]   ;;  %s366_s3 = inlined_call_operand.vmem [shape: f32[8,4], index: 3, kind: output, shape index: {0}]  }
   0x1   :  { %277 = vmatprep.subr.bf16.mxu0 %v290_v0  ;;  %v17_v1 = vld [vmem:[%s362_s1] sm:$0xff]  ;;  %v18_v2 = vld [vmem:[%s362_s1 + $0x8] sm:$0xff]  ;;  %261 = vmatprep.mubr.msk.f32.mxu0 %vm291_vm0, %v292_v3  ;;  %vm129_vm2 = vcmask 1041408   ;;  %vm293_vm3 = vmmov 1   ;;  %v241_v9 = vld [vmem:[%s362_s1 + $0x10] ss:$0 sm:$0xff] }
   0x2   :  { %v278_v4 = vpack.c.bf16 %v18_v2, %v17_v1  ;;  %284 = vmatprep.subr.bf16.mxu1 %v290_v0  ;;  %271 = vmatprep.mubr.msk.f32.mxu1 %vm291_vm0, %v292_v3  ;;  %v16_v5 = vld [vmem:[%s363_s0] sm:$0xff]  ;;  %v21_v7 = vld [vmem:[%s364_s2 + $0x8] sm:$0x3]  ;;  %vm282_vm4 = vmpackc.low %vm129_vm2, %vm293_vm3  ;;  %vm119_vm5 = vcmask 80896   ;;  %vm230_vm10 = vcmask 31744  }
   0x3   :  { %v20_v6 = vld [vmem:[%s364_s2] sm:$0xff]  ;;  %v243_v21 = vld [vmem:[%s364_s2 + $0xa] ss:$0 sm:$0xff] }
   0x4   :  { %279 = vmatpush3.bf16.msra.mxu0 %v278_v4  ;;  %v281_v8 = vpack.c.bf16 %v21_v7, %v20_v6 }
   0x5   :  { %280 = vmatprep.subr.bf16.mxu0 %v290_v0 }
   0x6   :  { %285 = vmatpush3.bf16.msk.msra.mxu1 %vm282_vm4, %v281_v8 }
   0x7   :  { %262 = vmatmul.mubr.msk.f32.vlgmr.msra.gmra.mrb[0].mxu0 %vm27_vm1, %v16_v5 }
   0x8   :  { %268 = vmatprep.mubr.msk.f32.mxu0 %vm291_vm0, %v292_v3  ;;  %283 = vmatpush3.bf16.msk.msra.mxu0 %vm282_vm4, %v281_v8 }
  0xda   :  { %v97_v10 = vpop.f32.mrb[0].mxu0 }
  0xdb   :  { %v98_v11 = vadd.f32 %v241_v9, %v97_v10  ;;  %v263_v12 = vpop.f32.mrb[1].mxu0 }
  0xdd   :  { %269 = vmatmul.mubr.msk.f32.vlgmr.msra.gmra.mrb[2].mxu0 %vm119_vm5, %v98_v11  ;;  %vm105_vm6 = vcmp.gt.f32.partialorder %v98_v11, 15.0  ;;  %v107_v13 = vmul.f32 1.5, %v98_v11 }
  0xde   :  { %v106_v15 = vsel %vm105_vm6, 15.0, %v292_v3 }
  0xdf   :  { %v108_v14 = vadd.f32 %v107_v13, %v98_v11 }
  0xe1   :  { %v109_v16 = vsub.f32 %v108_v14, %v106_v15 }
  0xe3   :  { %272 = vmatmul.mubr.msk.f32.vlgmr.msra.gmra.mrb[0].mxu1 %vm119_vm5, %v109_v16  ;;  %vm110_vm7 = vcmp.gt.f32.partialorder %v109_v16, 15.0  ;;  %v112_v17 = vmul.f32 1.5, %v109_v16 }
  0xe4   :  { %274 = vmatprep.mubr.msk.f32.mxu1 %vm291_vm0, %v292_v3  ;;  %v111_v19 = vsel %vm110_vm7, 15.0, %v292_v3 }
  0xe5   :  { %v113_v18 = vadd.f32 %v112_v17, %v98_v11 }
  0xe7   :  { %v114_v20 = vsub.f32 %v113_v18, %v111_v19 }
  0xe9   :  { %275 = vmatmul.mubr.msk.f32.gmra.mrb[2].mxu1 %vm119_vm5, %v114_v20 }
 0x1b0   :  { %v199_v22 = vpop.f32.mrb[2].mxu0 }
 0x1b1   :  { %v200_v23 = vadd.f32 %v243_v21, %v199_v22  ;;  %v270_v24 = vpop.f32.mrb[3].mxu0 }
 0x1b3   :  { %vm217_vm8 = vcmp.gt.f32.partialorder %v200_v23, 10.0  ;;  %v219_v26 = vmul.f32 5.0, %v200_v23 }
 0x1b4   :  { %v218_v30 = vsel %vm217_vm8, 10.0, %v292_v3 }
 0x1b6   :  { %v204_v25 = vpop.f32.mrb[0].mxu1 }
 0x1b7   :  { %v205_v27 = vadd.f32 %v243_v21, %v204_v25  ;;  %v273_v28 = vpop.f32.mrb[1].mxu1 }
 0x1b9   :  { %v220_v29 = vadd.f32 %v219_v26, %v205_v27 }
 0x1bb   :  { %v221_v31 = vsub.f32 %v220_v29, %v218_v30 }
 0x1bc   :  { %v209_v32 = vpop.f32.mrb[2].mxu1 }
 0x1bd   :  { %v210_v33 = vadd.f32 %v243_v21, %v209_v32  ;;  %vm222_vm9 = vcmp.gt.f32.partialorder %v221_v31, 10.0  ;;  %v224_v34 = vmul.f32 5.0, %v221_v31  ;;  %v276_v35 = vpop.f32.mrb[3].mxu1 }
 0x1be   :  { %v223_v37 = vsel %vm222_vm9, 10.0, %v292_v3 }
 0x1bf   :  { %v225_v36 = vadd.f32 %v224_v34, %v210_v33 }
 0x1c1   :  { %v226_v38 = vsub.f32 %v225_v36, %v223_v37 }
 0x1c3   :  { %vm227_vm11 = vcmp.gt.f32.partialorder %v226_v38, 10.0  ;;  %232 = vst.msk [vmem:[%s365_s4] sm:$0xff] %vm230_vm10, %v226_v38 }
 0x1c4   :  { %v248_v39 = vsel %vm227_vm11, 1.0, %v292_v3 }
 0x1c5   :  { %231 = vst.msk [vmem:[%s366_s3] sm:$0xff] %vm230_vm10, %v248_v39 }

</bundles_post_ra>
